<compile_context>
chip_gen: v7x
topology: tpu7x:2x2x1
jax: 0.10.0
libtpu: 0.0.40
codegen_flags: <defaults>
</compile_context>

<pallas_src>
import functools

import jax
import jax.numpy as jnp
from jax.experimental import pallas as pl
from jax.experimental.pallas import tpu as pltpu


def _ce_exp_kernel(x_ref, t_ref, o_ref, *, temperature, hw, tl):
    """Grid = (batch, spatial tiles).

    x_ref : (1, C, tl)  logits block  (C on sublanes, spatial on lanes)
    t_ref : (1, 1, tl)  int32 targets
    o_ref : (1, 1, tl)  per-lane partial loss sums, resident across the tile axis
    """
    j = pl.program_id(1)

    @pl.when(j == 0)
    def _():
        o_ref[...] = jnp.zeros_like(o_ref)

    x = x_ref[...].astype(jnp.float32)                       # (1, C, tl)
    t = t_ref[...]                                           # (1, 1, tl)

    # Numerically-stable log-softmax pieces along the class (sublane) axis.
    m = jnp.max(x, axis=1, keepdims=True)                    # (1, 1, tl)
    z = x - m                                                # (1, C, tl)
    lse = jnp.log(jnp.sum(jnp.exp(z), axis=1, keepdims=True))  # (1, 1, tl)

    # gather(target) without materializing log_softmax: logpt = z[tgt] - lse
    cls = jax.lax.broadcasted_iota(jnp.int32, x.shape, 1)    # (1, C, tl)
    z_t = jnp.sum(jnp.where(cls == t, z, 0.0), axis=1, keepdims=True)
    logpt = z_t - lse                                        # (1, 1, tl)

    loss = -logpt
    w = jnp.exp(jnp.clip(loss, 0.0, temperature) / (temperature + 1.0)) - 1.0
    loss = loss * w

    if hw % tl != 0:
        # Mask lanes past the true spatial extent (tail tile only; static check).
        lane = jax.lax.broadcasted_iota(jnp.int32, loss.shape, 2) + j * tl
        loss = jnp.where(lane < hw, loss, 0.0)

    o_ref[...] += loss


def _pick_spatial_tile(hw, c, itemsize, target_bytes=2 * 1024 * 1024):
    """Largest lane tile (multiple of 128) keeping the logits block ~target_bytes.

    ~2 MiB blocks keep double-buffered VMEM use well under the scoped default on
    every generation (16 MiB v5e / 32 MiB v6e/v7x) while sitting near HBM roofline.
    """
    cap = max(128, target_bytes // max(1, c * itemsize))
    if hw <= cap:
        return hw                       # whole spatial extent in one block
    return max(128, (cap // 128) * 128)


def cross_entropy_exp(logits, target, *, temperature=1.0, size_average=False):
    """Pallas implementation of CrossEntropyExp.forward."""
    if logits.ndim > 2:
        n, c = logits.shape[0], logits.shape[1]
        x = logits.reshape(n, c, -1)            # NCHW -> (N, C, H*W); no transpose
    else:
        # (M, C) path: put classes on sublanes, rows on lanes.
        # TODO(synk): a dedicated (M, C)-layout kernel would avoid this transpose.
        c = logits.shape[1]
        x = logits.T[None]                      # (1, C, M)
        n = 1
    hw = x.shape[2]
    t = target.reshape(n, 1, hw).astype(jnp.int32)

    tl = _pick_spatial_tile(hw, c, jnp.dtype(x.dtype).itemsize)
    n_tiles = pl.cdiv(hw, tl)

    kernel = functools.partial(
        _ce_exp_kernel, temperature=float(temperature), hw=hw, tl=tl)

    partials = pl.pallas_call(
        kernel,
        out_shape=jax.ShapeDtypeStruct((n, 1, tl), jnp.float32),
        grid_spec=pltpu.PrefetchScalarGridSpec(
            num_scalar_prefetch=0,
            grid=(n, n_tiles),
            in_specs=[
                pl.BlockSpec((1, c, tl), lambda i, j: (i, 0, j)),
                pl.BlockSpec((1, 1, tl), lambda i, j: (i, 0, j)),
            ],
            # Same output block across the spatial-tile axis -> resident
            # vector-shaped accumulator; written back once per batch row.
            out_specs=pl.BlockSpec((1, 1, tl), lambda i, j: (i, 0, 0)),
        ),
        compiler_params=pltpu.CompilerParams(
            dimension_semantics=("parallel", "arbitrary")),
    )(x, t)

    total = jnp.sum(partials)                   # tiny (N*tl) f32 reduce in XLA
    if size_average:
        total = total / (n * hw)
    return total


def _reference(logits_nchw, target_nhw, temperature=1.0, size_average=False):
    """Plain-JAX reference mirroring the PyTorch forward (sanity check)."""
    n, c = logits_nchw.shape[0], logits_nchw.shape[1]
    x = jnp.transpose(logits_nchw.reshape(n, c, -1), (0, 2, 1)).reshape(-1, c)
    t = target_nhw.reshape(-1)
    logp = jax.nn.log_softmax(x.astype(jnp.float32), axis=-1)
    logpt = jnp.take_along_axis(logp, t[:, None], axis=1)[:, 0]
    loss = -logpt
    w = jnp.exp(jnp.clip(loss, 0.0, temperature) / (temperature + 1.0)) - 1.0
    loss = loss * w
    return loss.mean() if size_average else loss.sum()


if __name__ == "__main__":
    key = jax.random.PRNGKey(0)
    k1, k2 = jax.random.split(key)

    N, C, H, W = 2, 4, 16, 16            # M = N*H*W = 512 spatial elements
    logits = jax.random.normal(k1, (N, C, H, W), dtype=jnp.float32)
    target = jax.random.randint(k2, (N, H, W), 0, C, dtype=jnp.int32)

    out = cross_entropy_exp(logits, target, temperature=1.0, size_average=False)
    out = jax.block_until_ready(out)

    ref = _reference(logits, target, temperature=1.0, size_average=False)
    assert jnp.allclose(out, ref, rtol=1e-5, atol=1e-4), (out, ref)

    # Also exercise the size_average=True path once.
    out_m = jax.block_until_ready(
        cross_entropy_exp(logits, target, temperature=1.0, size_average=True))
    ref_m = _reference(logits, target, temperature=1.0, size_average=True)
    assert jnp.allclose(out_m, ref_m, rtol=1e-5, atol=1e-5), (out_m, ref_m)

    print("KERNEL_OK")
</pallas_src>

<mosaic_0001>
module attributes {stable_mosaic.version = 11 : i64} {
  func.func @_ce_exp_kernel(%arg0: i32, %arg1: i32, %arg2: memref<1x4x256xf32, #tpu.memory_space<vmem>>, %arg3: memref<1x1x256xi32, #tpu.memory_space<vmem>>, %arg4: memref<1x1x256xf32, #tpu.memory_space<vmem>>) attributes {dimension_semantics = [#tpu.dimension_semantics<parallel>, #tpu.dimension_semantics<arbitrary>], iteration_bounds = array<i64: 2, 1>, scalar_prefetch = 0 : i64, scratch_operands = 0 : i64, tpu.core_type = #tpu.core_type<tc>, window_params = [{transform_indices = @transform_0, window_bounds = array<i64: 1, 4, 256>}, {transform_indices = @transform_1, window_bounds = array<i64: 1, 1, 256>}, {transform_indices = @transform_2, window_bounds = array<i64: 1, 1, 256>}]} {
    %c0_i32 = arith.constant 0 : i32
    %0 = arith.cmpi eq, %arg1, %c0_i32 : i32
    %1 = arith.extui %0 : i1 to i32
    %c0_i32_0 = arith.constant 0 : i32
    %2 = arith.cmpi ne, %1, %c0_i32_0 : i32
    scf.if %2 {
      %cst_20 = arith.constant 0.000000e+00 : f32
      %36 = vector.broadcast %cst_20 : f32 to vector<1x1x256xf32>
      %c0_21 = arith.constant 0 : index
      %c0_22 = arith.constant 0 : index
      %c0_23 = arith.constant 0 : index
      %37 = vector.load %arg4[%c0_21, %c0_22, %c0_23] : memref<1x1x256xf32, #tpu.memory_space<vmem>>, vector<1x1x256xf32>
      tpu.vector_store %arg4[%c0_21, %c0_22, %c0_23], %36 {strides = array<i32>} : memref<1x1x256xf32, #tpu.memory_space<vmem>>, vector<1x1x256xf32>,
    } else {
    }
    %c0 = arith.constant 0 : index
    %c0_1 = arith.constant 0 : index
    %c0_2 = arith.constant 0 : index
    %3 = vector.load %arg2[%c0, %c0_1, %c0_2] : memref<1x4x256xf32, #tpu.memory_space<vmem>>, vector<1x4x256xf32>
    %c0_3 = arith.constant 0 : index
    %c0_4 = arith.constant 0 : index
    %c0_5 = arith.constant 0 : index
    %4 = vector.load %arg3[%c0_3, %c0_4, %c0_5] : memref<1x1x256xi32, #tpu.memory_space<vmem>>, vector<1x1x256xi32>
    %cst = arith.constant dense<0xFF800000> : vector<1x256xf32>
    %5 = vector.multi_reduction <maximumf>, %3, %cst [1] : vector<1x4x256xf32> to vector<1x256xf32>
    %6 = vector.shape_cast %5 : vector<1x256xf32> to vector<1x1x256xf32>
    %7 = vector.broadcast %6 : vector<1x1x256xf32> to vector<1x4x256xf32>
    %8 = arith.subf %3, %7 : vector<1x4x256xf32>
    %9 = math.exp %8 : vector<1x4x256xf32>
    %cst_6 = arith.constant dense<0.000000e+00> : vector<1x256xf32>
    %10 = vector.multi_reduction <add>, %9, %cst_6 [1] : vector<1x4x256xf32> to vector<1x256xf32>
    %11 = vector.shape_cast %10 : vector<1x256xf32> to vector<1x1x256xf32>
    %12 = math.log %11 : vector<1x1x256xf32>
    %13 = tpu.iota {dimensions = array<i32: 1>} : vector<1x4x256xi32>
    %14 = vector.broadcast %4 : vector<1x1x256xi32> to vector<1x4x256xi32>
    %15 = arith.cmpi eq, %13, %14 : vector<1x4x256xi32>
    %cst_7 = arith.constant 0.000000e+00 : f32
    %16 = vector.broadcast %cst_7 : f32 to vector<1x4x256xf32>
    %17 = arith.select %15, %8, %16 : vector<1x4x256xi1>, vector<1x4x256xf32>
    %cst_8 = arith.constant dense<0.000000e+00> : vector<1x256xf32>
    %18 = vector.multi_reduction <add>, %17, %cst_8 [1] : vector<1x4x256xf32> to vector<1x256xf32>
    %19 = vector.shape_cast %18 : vector<1x256xf32> to vector<1x1x256xf32>
    %20 = arith.subf %19, %12 : vector<1x1x256xf32>
    %cst_9 = arith.constant 0.000000e+00 : f32
    %21 = vector.broadcast %cst_9 : f32 to vector<1x1x256xf32>
    %22 = arith.subf %21, %20 : vector<1x1x256xf32>
    %cst_10 = arith.constant 0.000000e+00 : f32
    %cst_11 = arith.constant 1.000000e+00 : f32
    %23 = vector.broadcast %cst_10 : f32 to vector<1x1x256xf32>
    %24 = arith.maximumf %23, %22 : vector<1x1x256xf32>
    %25 = vector.broadcast %cst_11 : f32 to vector<1x1x256xf32>
    %26 = arith.minimumf %25, %24 : vector<1x1x256xf32>
    %cst_12 = arith.constant 2.000000e+00 : f32
    %27 = vector.broadcast %cst_12 : f32 to vector<1x1x256xf32>
    %28 = arith.divf %26, %27 : vector<1x1x256xf32>
    %29 = math.exp %28 : vector<1x1x256xf32>
    %cst_13 = arith.constant 1.000000e+00 : f32
    %30 = vector.broadcast %cst_13 : f32 to vector<1x1x256xf32>
    %31 = arith.subf %29, %30 : vector<1x1x256xf32>
    %32 = arith.mulf %22, %31 : vector<1x1x256xf32>
    %c0_14 = arith.constant 0 : index
    %c0_15 = arith.constant 0 : index
    %c0_16 = arith.constant 0 : index
    %33 = vector.load %arg4[%c0_14, %c0_15, %c0_16] : memref<1x1x256xf32, #tpu.memory_space<vmem>>, vector<1x1x256xf32>
    %34 = arith.addf %33, %32 : vector<1x1x256xf32>
    %c0_17 = arith.constant 0 : index
    %c0_18 = arith.constant 0 : index
    %c0_19 = arith.constant 0 : index
    %35 = vector.load %arg4[%c0_17, %c0_18, %c0_19] : memref<1x1x256xf32, #tpu.memory_space<vmem>>, vector<1x1x256xf32>
    tpu.vector_store %arg4[%c0_17, %c0_18, %c0_19], %34 {strides = array<i32>} : memref<1x1x256xf32, #tpu.memory_space<vmem>>, vector<1x1x256xf32>,
    return
  }
  func.func @transform_0(%arg0: i32, %arg1: i32) -> (i32, i32, i32) {
    %c0_i32 = arith.constant 0 : i32
    %c0_i32_0 = arith.constant 0 : i32
    return %arg0, %c0_i32, %arg1 : i32, i32, i32
  }
  func.func @transform_1(%arg0: i32, %arg1: i32) -> (i32, i32, i32) {
    %c0_i32 = arith.constant 0 : i32
    %c0_i32_0 = arith.constant 0 : i32
    return %arg0, %c0_i32, %arg1 : i32, i32, i32
  }
  func.func @transform_2(%arg0: i32, %arg1: i32) -> (i32, i32, i32) {
    %c0_i32 = arith.constant 0 : i32
    %c0_i32_0 = arith.constant 0 : i32
    %c0_i32_1 = arith.constant 0 : i32
    return %arg0, %c0_i32, %c0_i32_0 : i32, i32, i32
  }
}

</mosaic_0001>

<bundles_post_ra>
// kernel: tpu_custom_call.1
= control target key start
LH: loop header
LB: loop body
LE: loop exit
PB: predicated region body
PF: predicated region fallthrough
CT: control target
= control target key end

     0   :  { %7 = vsyncpa [#allocation3], 0  ;;  %s988_s0 = inlined_call_operand.hbm [shape: f32[2,4,256], index: 0, kind: input, shape index: {}]   ;;  %s989_s1 = inlined_call_operand.hbm [shape: s32[2,1,256], index: 1, kind: input, shape index: {}]   ;;  %s990_s2 = inlined_call_operand.hbm [shape: f32[2,1,256], index: 2, kind: output, shape index: {}]  }
   0x1   :  { %9 = vsyncpa [#allocation3 + $0x1], 0 }
   0x2   :  { %10 = vsyncpa [#allocation6], 0 }
   0x3   :  { %12 = vsyncpa [#allocation6 + $0x1], 0 }
   0x4   :  { %13 = vsyncpa [#allocation4], 0 }
   0x5   :  { %15 = vsyncpa [#allocation4 + $0x1], 0  ;;  %s746_s9 = smov 0   ;;  %s748_s10 = smov 0  }
   0x6   :  { %s750_s11 = smov 0   ;;  %s752_s12 = smov 0  }
   0x7   :  { %s754_s13 = smov 0   ;;  %s756_s14 = smov 0  }
   0x8 LB: > { %s474_s15 = sadd.s32 4294967295, %s724_s14   ;;  %s475_s16 = sadd.s32 4294967294, %s724_s14   ;;  %s724_s14 = sphi %s756_s14, %s21_s14   ;;  %s720_s13 = sphi %s754_s13, %s1012_s13   ;;  %s716_s12 = sphi %s752_s12, %s1011_s12   ;;  %s712_s11 = sphi %s750_s11, %s1010_s11   ;;  %s708_s10 = sphi %s748_s10, %s1009_s10   ;;  %s704_s9 = sphi %s746_s9, %s1008_s9  }
   0x9   : > { %s33_s17 = sadd.s32 1, %s720_s13  ;;  %s42_s18 = sadd.s32 1, %s712_s11 }
   0xa   : > { %p35_p0 = scmp.ge.s32.totalorder %s33_s17, 2  ;;  %p49_p1 = scmp.ne.s32.totalorder %s712_s11, %s708_s10 }
   0xb   : > { %p50_p2 = scmp.eq.s32.totalorder %s724_s14, 0  ;;  %p55_p3 = scmp.ne.s32.totalorder %s708_s10, %s704_s9 }
   0xc   : > { %s1014_s17 = smov (%p35_p0, %s33_s17), 0  ;;  %p56_p5 = scmp.eq.s32.totalorder %s474_s15, 0 }
   0xd   : > { %p787_p4 = por %p50_p2, %p49_p1  ;;  %s37_s20 = ssub.s32 %s720_s13, %s1014_s17 }
   0xe   : > { %p107_p6 = scmp.eq.s32.totalorder %s474_s15, 1  ;;  %p40_p7 = scmp.eq.s32.totalorder %s37_s20, 0 }
   0xf   : > { %p793_p8 = por %p56_p5, %p55_p3  ;;  %p113_p10 = scmp.eq.s32.totalorder %s475_s16, 1 }
  0x10   : > { %p797_p9 = por %p107_p6, %p49_p1  ;;  %p515_p13 = scmp.lt.s32.totalorder %s724_s14, 2 }
  0x11   : > { %s994_s21 = scalar_select %p793_p8, 1, 0 }
  0x12   : > { %s995_s22 = scalar_select %p797_p9, 1, 0 }
  0x13   : > { %s802_s23 = scalar_select %p40_p7, %s712_s11, %s42_s18  }
  0x14   : > { %p804_p11 = por %p113_p10, %p55_p3  ;;  %s811_s25 = sand.u32 1, %s712_s11  }
  0x15   : > { %s478_s26 = sshll.u32 %s811_s25, 3  ;;  %s495_s27 = sshll.u32 %s720_s13, 7 }
  0x16   : > { %s996_s24 = scalar_select %p804_p11, 1, 0 }
  0x17   : > { %s818_s30 = scalar_lea.hbm %s988_s0, %s495_s27  ;;  %s137_s3 = scalar_lea.vmem [#allocation2], %s478_s26 }
  0x18   : > { %s147_s4 = sshll.u32 %s137_s3, 4  ;;  %p824_p0 = pnand %p515_p13, %p787_p4  ;;  %s820_s4 = int_to_ptr.vmem [resolvable:$true] %s147_s4 }
  0x19   : > { %s134_s6 = scalar_lea.sflag [#allocation3], %s811_s25  ;;  %s578_s7 = scalar_lea.hbm %s818_s30, 128 }
  0x1a   : > { %p579_p3 = scmp.ne.s32.totalorder %s818_s30, %s578_s7  ;;  %p580_p5 = pneg %p824_p0 }
  0x1b   : > { %s583_s16 = scalar_lea.hbm %s988_s0, 256  ;;  %p584_p4 = scmp.lt.u32.totalorder %s818_s30, %s988_s0 }
  0x1c   : > { %p581_p6 = pnand %p580_p5, %p579_p3  ;;  %p585_p10 = scmp.lt.u32.totalorder %s583_s16, %s578_s7 }
  0x1d   : > { %p587_p12 = scmp.lt.u32.totalorder %s578_s7, %s818_s30 }
  0x1e   : > { %p582_p7 = pneg %p581_p6  ;;  %p586_p13 = por %p585_p10, %p584_p4 }
  0x20   : > { %p588_p1 = por %p587_p12, %p586_p13 }
  0x22   : > { %p589_p2 = pnand %p588_p1, %p582_p7 }
  0x24   : > { %592 = shalt.err (!%p589_p2)
}
  0x25   : > { %s593_s20 = scalar_lea.vmem %s820_s4, 128  ;;  %s726_s26 = smov [#allocation2]  }
  0x26   : > { %p594_p3 = scmp.ne.s32.totalorder %s820_s4, %s593_s20  ;;  %s598_s27 = sshll.u32 %s726_s26, 4  ;;  %s599_s27 = int_to_ptr.vmem [resolvable:$false] %s598_s27 }
  0x27   : > { %s600_s28 = scalar_lea.vmem %s599_s27, 256  ;;  %p601_p9 = scmp.lt.s32.totalorder %s820_s4, %s599_s27 }
  0x28   : > { %p596_p6 = pnand %p594_p3, %p580_p5  ;;  %p602_p4 = scmp.lt.s32.totalorder %s600_s28, %s593_s20 }
  0x2a   : > { %p597_p11 = pneg %p596_p6  ;;  %p603_p10 = por %p602_p4, %p601_p9 }
  0x2c   : > { %p604_p12 = pnand %p603_p10, %p597_p11 }
  0x2e   : > { %607 = shalt.err (!%p604_p12)
}
  0x2f   : > { %507 = dma.hbm_to_vmem [thread:$0]  (!%p824_p0), %s818_s30, 128, %s820_s4, %s134_s6  }
  0x30   : > { %p998_p1 = scmp.lt.s32.totalorder %s724_s14, 3  ;;  %p999_p2 = scmp.ge.s32.totalorder %s724_s14, 1 }
  0x31   : > { %s481_s3 = sshll.u32 %s811_s25, 1  ;;  %s496_s7 = sshll.u32 %s720_s13, 5 }
  0x32   : > { %p860_p7 = pnand %p999_p2, %p998_p1  ;;  %s869_s16 = scalar_lea.hbm %s989_s1, %s496_s7 }
  0x33   : > { %s158_s18 = scalar_lea.vmem [#allocation5], %s481_s3  ;;  %s155_s30 = scalar_lea.sflag [#allocation6], %s811_s25 }
  0x34   : > { %s1000_s29 = scalar_select %p860_p7, 1, 0 }
  0x35   : > { %s168_s19 = sshll.u32 %s158_s18, 4  ;;  %s608_s4 = scalar_lea.hbm %s869_s16, 32  ;;  %s169_s19 = int_to_ptr.vmem [resolvable:$true] %s168_s19 }
  0x36   : > { %p609_p9 = scmp.ne.s32.totalorder %s869_s16, %s608_s4  ;;  %s613_s26 = scalar_lea.hbm %s989_s1, 64 }
  0x37   : > { %p614_p3 = scmp.lt.u32.totalorder %s869_s16, %s989_s1  ;;  %p615_p6 = scmp.lt.u32.totalorder %s613_s26, %s608_s4 }
  0x38   : > { %p611_p11 = pnand %p609_p9, %p580_p5  ;;  %p617_p10 = scmp.lt.u32.totalorder %s608_s4, %s869_s16 }
  0x39   : > { %p616_p4 = por %p615_p6, %p614_p3 }
  0x3a   : > { %p612_p13 = pneg %p611_p11 }
  0x3b   : > { %p618_p12 = por %p617_p10, %p616_p4 }
  0x3d   : > { %p619_p1 = pnand %p618_p12, %p612_p13 }
  0x3f   : > { %622 = shalt.err (!%p619_p1)
}
  0x40   : > { %s623_s25 = scalar_lea.vmem %s169_s19, 32  ;;  %s727_s3 = smov [#allocation5]  }
  0x41   : > { %p624_p2 = scmp.ne.s32.totalorder %s169_s19, %s623_s25  ;;  %s628_s7 = sshll.u32 %s727_s3, 4  ;;  %s629_s7 = int_to_ptr.vmem [resolvable:$false] %s628_s7 }
  0x42   : > { %s630_s8 = scalar_lea.vmem %s629_s7, 64  ;;  %p631_p8 = scmp.lt.s32.totalorder %s169_s19, %s629_s7 }
  0x43   : > { %p626_p9 = pnand %p624_p2, %p580_p5  ;;  %p632_p7 = scmp.lt.s32.totalorder %s630_s8, %s623_s25 }
  0x45   : > { %p627_p11 = pneg %p626_p9  ;;  %p633_p3 = por %p632_p7, %p631_p8 }
  0x47   : > { %p634_p6 = pnand %p633_p3, %p627_p11 }
  0x49   : > { %637 = shalt.err (!%p634_p6)
}
  0x4a   : > { %510 = dma.hbm_to_vmem [thread:$0]  (!%p824_p0), %s869_s16, 32, %s169_s19, %s155_s30  }
  0x4b   : > { %p1001_p13 = scmp.ne.s32.totalorder %s1000_s29, 0 }
  0x4c   : > { %s894_s15 = sand.u32 (!%p1001_p13), 1, %s708_s10   ;;  %p1002_p5 = scmp.ne.s32.totalorder (!%p1001_p13), %s994_s21, 0 }
  0x4d   : > { %177 = sbr.rel (%p1001_p13) target bundleno = 198 (0xc6), region = 28  ;;  %s485_s18 = sshll.u32 (!%p1001_p13), %s894_s15, 3 }
  0x4e   : > { %s180_s4 = scalar_lea.sflag (!%p1001_p13), [#allocation3], %s894_s15  ;;  %s183_s6 = scalar_lea.vmem (!%p1001_p13), [#allocation2], %s485_s18 }
  0x54   : > { %691 = dma.done.wait (%p1002_p5), %s180_s4, 128  }
  0x55   : > { %693 = vsyncadd (%p1002_p5), %s180_s4, 4294967168  ;;  %s486_s5 = sshll.u32 %s894_s15, 1  ;;  %s189_s29 = scalar_lea.sflag [#allocation6], %s894_s15 }
  0x56   : > { %s192_s16 = scalar_lea.vmem [#allocation5], %s486_s5 }
  0x57   : > { %695 = dma.done.wait (%p1002_p5), %s189_s29, 32  }
  0x58   : > { %697 = vsyncadd (%p1002_p5), %s189_s29, 4294967264  ;;  %v224_v0 = vlaneseq  ;;  %s912_s19 = scalar_lea.vmem [#allocation7], %s486_s5  ;;  %v728_v2 = vmov 0.0   ;;  %vm234_vm1 = vcmask 1043456   ;;  %v229_v3 = vld [vmem:[%s183_s6] sm:$0xff]  ;;  %s497_s21 = sshll.u32 %s716_s12, 5 }
  0x59   : > { %v232_v4 = vcombine.high %v229_v3, %v229_v3  ;;  %v235_v5 = vsel %vm234_vm1, %v229_v3, -inf  ;;  %v230_v23 = vld [vmem:[%s192_s16] sm:$0x3]  ;;  %s367_s30 = sshll.u32 %s912_s19, 4  ;;  %s936_s27 = scalar_lea.hbm %s990_s2, %s497_s21  ;;  %s938_s30 = int_to_ptr.vmem [resolvable:$true] %s367_s30 }
  0x5a   : > { %vm908_vm0 = vcmp.lt.s32.totalorder %v224_v0, 256  ;;  %v236_v6 = vrot.slane %v235_v5, 4  ;;  %v919_v19 = vshrl.u32 %v224_v0, 7  ;;  %s353_s28 = scalar_lea.sflag [#allocation4], %s894_s15  ;;  %s638_s25 = scalar_lea.vmem %s938_s30, 32 }
  0x5b   : > { %228 = vst.msk [vmem:[%s912_s19] sm:$0x3] %vm908_vm0, %v728_v2  ;;  %v242_v7 = vsel %vm234_vm1, %v232_v4, -inf  ;;  %p639_p8 = scmp.ne.s32.totalorder %s938_s30, %s638_s25  ;;  %p1005_p0 = scmp.ne.s32.totalorder %s995_s22, 0 }
  0x5c   : > { %v237_v8 = vmax.f32 %v235_v5, %v236_v6  ;;  %v243_v9 = vrot.slane %v242_v7, 4  ;;  %v281_v22 = vsub.s32 0, %v919_v19  ;;  %v285_v25 = vsub.s32 1, %v919_v19  ;;  %s730_s12 = smov [#allocation7]  }
  0x5d   : > { %p640_p7 = pnand %p639_p8, %p1005_p0  ;;  %s642_s3 = sshll.u32 %s730_s12, 4  ;;  %s643_s3 = int_to_ptr.vmem [resolvable:$false] %s642_s3 }
  0x5e   : > { %v238_v10 = vrot.slane %v237_v8, 2  ;;  %v244_v11 = vmax.f32 %v242_v7, %v243_v9  ;;  %v282_v26 = vrot.slane %v230_v23, %v281_v22  ;;  %v286_v27 = vrot.slane %v230_v23, %v285_v25  ;;  %s644_s7 = scalar_lea.vmem %s643_s3, 64  ;;  %p645_p10 = scmp.lt.s32.totalorder %s938_s30, %s643_s3 }
  0x5f   : > { %p641_p4 = pneg %p640_p7  ;;  %p646_p12 = scmp.lt.s32.totalorder %s644_s7, %s638_s25 }
  0x60   : > { %v239_v12 = vmax.f32 %v237_v8, %v238_v10  ;;  %v245_v13 = vrot.slane %v244_v11, 2  ;;  %vm287_vm2 = vcmp.eq.s32.totalorder %v919_v19, %v282_v26  ;;  %vm288_vm3 = vcmp.eq.s32.totalorder %v919_v19, %v286_v27 }
  0x61   : > { %p647_p1 = por %p646_p12, %p645_p10 }
  0x62   : > { %v240_v14 = vrot.slane %v239_v12, 1  ;;  %v246_v15 = vmax.f32 %v244_v11, %v245_v13  ;;  %v327_v27 = vld [vmem:[%s912_s19] sm:$0x3] }
  0x63   : > { %p648_p2 = pnand %p647_p1, %p641_p4 }
  0x64   : > { %v241_v16 = vmax.f32 %v239_v12, %v240_v14  ;;  %v247_v17 = vrot.slane %v246_v15, 1  ;;  %v729_v14 = vmov 1966171168  }
  0x66   : > { %v248_v18 = vmax.f32 %v246_v15, %v247_v17  ;;  %v332_v15 = vunpack.c.l.s4 %v729_v14 }
  0x68   : > { %v251_v20 = vcombine.low %v241_v16, %v248_v18  ;;  %v333_v18 = vunpack.c.0.s8 %v332_v15 }
  0x6a   : > { %v253_v21 = vsub.f32 %v229_v3, %v251_v20 }
  0x6c   : > { %v254_v24 = vmul.f32 1.442695, %v253_v21  ;;  %v290_v28 = vcombine.high %v253_v21, %v253_v21  ;;  %v292_v29 = vsel %vm287_vm2, %v253_v21, 0.0 }
  0x6d   : > { %v294_v32 = vsel %vm234_vm1, %v292_v29, 0.0 }
  0x6e   : > { %568 = vpow2.f32 %v254_v24  ;;  %v293_v30 = vsel %vm288_vm3, %v290_v28, 0.0  ;;  %v295_v38 = vrot.slane %v294_v32, 4  ;;  %v336_v24 = vsub.s32 %v333_v18, %v919_v19 }
  0x6f   : > { %v301_v36 = vsel %vm234_vm1, %v293_v30, 0.0 }
  0x70   : > { %v302_v41 = vrot.slane %v301_v36, 4  ;;  %v296_v44 = vadd.f32 %v295_v38, %v294_v32 }
  0x72   : > { %v303_v47 = vadd.f32 %v302_v41, %v301_v36  ;;  %v297_v50 = vrot.slane %v296_v44, 2 }
  0x74   : > { %v304_v53 = vrot.slane %v303_v47, 2  ;;  %v298_v55 = vadd.f32 %v297_v50, %v296_v44 }
  0x76   : > { %v305_v56 = vadd.f32 %v304_v53, %v303_v47  ;;  %v299_v57 = vrot.slane %v298_v55, 1 }
  0x78   : > { %v569_v31 = vpop.eup %568  ;;  %v306_v58 = vrot.slane %v305_v56, 1  ;;  %v300_v59 = vadd.f32 %v299_v57, %v298_v55 }
  0x79   : > { %v257_v33 = vcombine.high %v569_v31, %v569_v31  ;;  %v259_v34 = vsel %vm234_vm1, %v569_v31, 0.0 }
  0x7a   : > { %v260_v35 = vrot.slane %v259_v34, 4  ;;  %v307_v62 = vadd.f32 %v306_v58, %v305_v56 }
  0x7b   : > { %v266_v37 = vsel %vm234_vm1, %v257_v33, 0.0 }
  0x7c   : > { %v261_v39 = vadd.f32 %v260_v35, %v259_v34  ;;  %v267_v40 = vrot.slane %v266_v37, 4 }
  0x7e   : > { %v262_v42 = vrot.slane %v261_v39, 2  ;;  %v268_v43 = vadd.f32 %v267_v40, %v266_v37 }
  0x80   : > { %v263_v45 = vadd.f32 %v262_v42, %v261_v39  ;;  %v269_v46 = vrot.slane %v268_v43, 2 }
  0x82   : > { %v264_v48 = vrot.slane %v263_v45, 1  ;;  %v270_v49 = vadd.f32 %v269_v46, %v268_v43 }
  0x84   : > { %v265_v51 = vadd.f32 %v264_v48, %v263_v45  ;;  %v271_v52 = vrot.slane %v270_v49, 1 }
  0x86   : > { %v272_v54 = vadd.f32 %v271_v52, %v270_v49  ;;  %570 = vlog2.f32 %v265_v51 }
  0x88   : > { %572 = vlog2.f32 %v272_v54 }
  0x90   : > { %v571_v60 = vpop.eup %570 }
  0x91   : > { %v274_v61 = vmul.f32 0.6931472, %v571_v60 }
  0x92   : > { %v573_v63 = vpop.eup %572 }
  0x93   : > { %v276_v0 = vmul.f32 0.6931472, %v573_v63  ;;  %v308_v2 = vsub.f32 %v300_v59, %v274_v61 }
  0x95   : > { %v309_v3 = vsub.f32 %v307_v62, %v276_v0  ;;  %v310_v4 = vsub.f32 0.0, %v308_v2 }
  0x97   : > { %v311_v5 = vsub.f32 0.0, %v309_v3  ;;  %v312_v6 = vmax.f32 %v310_v4, 0.0 }
  0x99   : > { %v313_v7 = vmax.f32 %v311_v5, 0.0  ;;  %v314_v8 = vmin.f32 %v312_v6, 1.0 }
  0x9b   : > { %v315_v9 = vmin.f32 %v313_v7, 1.0  ;;  %v317_v10 = vmul.f32 0.5, %v314_v8 }
  0x9d   : > { %v318_v11 = vmul.f32 0.5, %v315_v9  ;;  %v319_v12 = vmul.f32 1.442695, %v317_v10 }
  0x9f   : > { %574 = vpow2.f32 %v319_v12  ;;  %v321_v13 = vmul.f32 1.442695, %v318_v11 }
  0xa1   : > { %576 = vpow2.f32 %v321_v13 }
  0xa9   : > { %v575_v16 = vpop.eup %574 }
  0xaa   : > { %v488_v17 = vadd.f32 -1.0, %v575_v16 }
  0xab   : > { %v577_v20 = vpop.eup %576 }
  0xac   : > { %v489_v21 = vadd.f32 -1.0, %v577_v20  ;;  %v325_v22 = vmul.f32 %v488_v17, %v310_v4 }
  0xae   : > { %v326_v23 = vmul.f32 %v489_v21, %v311_v5 }
  0xb0   : > { %v330_v25 = vcombine.low %v325_v22, %v326_v23 }
  0xb2   : > { %v337_v26 = vrot.slane %v330_v25, %v336_v24 }
  0xb4   : > { %v344_v28 = vrot.slane %v337_v26, %v336_v24 }
  0xb6   : > { %v346_v29 = vadd.f32 %v344_v28, %v327_v27 }
  0xb8   : > { %351 = vst.msk [vmem:[%s912_s19] sm:$0x3] %vm908_vm0, %v346_v29 }
  0xb9   : > { %651 = shalt.err (!%p648_p2)
}
  0xba   : > { %s652_s8 = scalar_lea.hbm %s936_s27, 32  ;;  %s656_s4 = scalar_lea.hbm %s990_s2, 64 }
  0xbb   : > { %p653_p9 = scmp.ne.s32.totalorder %s936_s27, %s652_s8  ;;  %p657_p6 = scmp.lt.u32.totalorder %s936_s27, %s990_s2 }
  0xbc   : > { %p658_p13 = scmp.lt.u32.totalorder %s656_s4, %s652_s8  ;;  %p660_p8 = scmp.lt.u32.totalorder %s652_s8, %s936_s27 }
  0xbd   : > { %p654_p11 = pnand %p653_p9, %p1005_p0 }
  0xbe   : > { %p659_p5 = por %p658_p13, %p657_p6 }
  0xbf   : > { %p655_p3 = pneg %p654_p11 }
  0xc0   : > { %p661_p7 = por %p660_p8, %p659_p5 }
  0xc2   : > { %p662_p4 = pnand %p661_p7, %p655_p3 }
  0xc4   : > { %665 = shalt.err (!%p662_p4)
}
  0xc5   : > { %502 = dma.vmem_to_hbm [thread:$0]  (%p1005_p0), %s938_s30, 32, %s936_s27, %s353_s28  }
  0xc6 PF: > { %s379_s29 = sand.u32 1, %s704_s9   ;;  %p1006_p10 = scmp.ne.s32.totalorder %s996_s24, 0 }
  0xc7   : > { %p1007_p12 = scmp.ge.s32.totalorder %s724_s14, 2  ;;  %s380_s16 = scalar_lea.sflag [#allocation4], %s379_s29 }
  0xc9   : > { %p512_p1 = pnand %p1007_p12, %p1006_p10 }
  0xcb   : > { %699 = dma.done.wait (!%p512_p1), %s380_s16, 32  }
  0xcc   : > { %701 = vsyncadd (!%p512_p1), %s380_s16, 4294967264  ;;  %s21_s14 = sadd.s32 1, %s724_s14   ;;  %s1008_s9 = smov %s708_s10 }
  0xcd   : > { %p18_p2 = scmp.ge.s32.totalorder %s21_s14, 4   ;;  %s1009_s10 = smov %s712_s11 }
  0xce   : > { %s1010_s11 = smov %s802_s23  ;;  %s1011_s12 = smov %s720_s13 }
  0xcf   : > { %s1012_s13 = smov %s1014_s17  ;;  %20 = sbr.rel (!%p18_p2) target bundleno = 8 (0x8), region = 90 }
  0xd6   :  { %385 = vsyncpa [#allocation3], 1 }
  0xd7   :  { %387 = vsyncpa [#allocation3 + $0x1], 1 }
  0xd8   :  { %388 = vsyncpa [#allocation6], 1 }
  0xd9   :  { %390 = vsyncpa [#allocation6 + $0x1], 1 }
  0xda   :  { %391 = vsyncpa [#allocation4], 1 }
  0xdb   :  { %393 = vsyncpa [#allocation4 + $0x1], 1 }

</bundles_post_ra>
